<compile_context>
chip_gen: v5e
topology: v5e:2x2
jax: 0.10.0
libtpu: 0.0.40
codegen_flags: <defaults>
</compile_context>

<pallas_src>
import functools

import jax
import jax.numpy as jnp
from jax.experimental import pallas as pl
from jax.experimental.pallas import tpu as pltpu


# ----------------------------------------------------------------------------
# Mel filterbank construction (HTK scale, no norm) -- plain JAX "glue".
# ----------------------------------------------------------------------------
def _hz_to_mel_htk(freq):
    return 2595.0 * jnp.log10(1.0 + freq / 700.0)


def _mel_to_hz_htk(mel):
    return 700.0 * (10.0 ** (mel / 2595.0) - 1.0)


def melscale_fbanks(n_freqs, f_min, f_max, n_mels, sample_rate):
    """Replicates torchaudio.functional.melscale_fbanks (htk scale, no norm).

    Returns fb of shape (n_freqs, n_mels), float32.
    """
    all_freqs = jnp.linspace(0.0, sample_rate // 2, n_freqs)
    m_min = _hz_to_mel_htk(jnp.asarray(f_min, jnp.float32))
    m_max = _hz_to_mel_htk(jnp.asarray(f_max, jnp.float32))
    m_pts = jnp.linspace(m_min, m_max, n_mels + 2)
    f_pts = _mel_to_hz_htk(m_pts)

    f_diff = f_pts[1:] - f_pts[:-1]                      # (n_mels + 1,)
    slopes = f_pts[None, :] - all_freqs[:, None]         # (n_freqs, n_mels + 2)
    down_slopes = (-slopes[:, :-2]) / f_diff[:-1]        # (n_freqs, n_mels)
    up_slopes = slopes[:, 2:] / f_diff[1:]               # (n_freqs, n_mels)
    fb = jnp.maximum(0.0, jnp.minimum(down_slopes, up_slopes))
    return fb.astype(jnp.float32)


# ----------------------------------------------------------------------------
# Kernels.
# ----------------------------------------------------------------------------
def _inverse_mel_kernel(w_ref, mel_ref, out_ref):
    """w: (F, M) f32 resident; mel: (M, tile_t); out: (F, tile_t)."""
    mel = mel_ref[...].astype(jnp.float32)               # bf16 stays bf16 in HBM
    spec = jnp.dot(w_ref[...], mel, preferred_element_type=jnp.float32)
    out_ref[...] = jnp.maximum(spec, 0.0).astype(out_ref.dtype)


def _inverse_mel_kernel_batched(w_ref, mel_ref, out_ref):
    """w: (F, M) f32; mel: (nb, M, tile_t); out: (nb, F, tile_t); nb small/static."""
    w = w_ref[...]
    for i in range(mel_ref.shape[0]):                    # static unroll, nb <= _MAX_NB
        mel_i = mel_ref[i].astype(jnp.float32)
        spec = jnp.dot(w, mel_i, preferred_element_type=jnp.float32)
        out_ref[i] = jnp.maximum(spec, 0.0).astype(out_ref.dtype)
    # TODO(synk): for very small T with huge batch counts, a single folded
    # (M, nb*T) matmul per block would amortize MXU issue overhead better.


# ----------------------------------------------------------------------------
# Tiling policy.
# ----------------------------------------------------------------------------
_MAX_NB = 16          # cap on batch elements folded into one block (static unroll)
_MIN_GRID_STEPS = 8   # >= 4 pipeline steps per TensorCore on v7x


@functools.lru_cache(maxsize=1)
def _generation_params():
    """-> (per-step column target, per-step output-byte target, vmem_limit_bytes)."""
    kind = ""
    try:
        kind = jax.devices()[0].device_kind.lower()
    except Exception:
        pass
    if "v5 lite" in kind or "v5e" in kind or "v5litepod" in kind:
        return 2048, 1 << 20, 64 << 20     # ~0.8 TB/s HBM; 128 MiB physical VMEM
    if "v6" in kind:
        return 4096, 3 << 19, 64 << 20     # ~1.4 TB/s HBM; 128 MiB physical VMEM
    if "v7" in kind:
        return 4096, 2 << 20, 48 << 20     # ~3.2 TB/s HBM; only 64 MiB physical VMEM
    return 2048, 1 << 20, None             # unknown: keep default scoped VMEM


def _largest_divisor_leq(n, k):
    k = max(1, min(n, k))
    for d in range(k, 0, -1):
        if n % d == 0:
            return d
    return 1


def _choose_tiling(N, M, F, T, in_item, out_item,
                   gen_cols, target_out_bytes, vmem_limit, min_steps):
    """Pick (nb, tile_t): batch fold and time-tile width for one grid step."""
    target_cols = max(gen_cols, target_out_bytes // max(1, F * out_item))
    t_floor = (T // 128) * 128             # largest lane-tileable width <= T

    if T <= target_cols or t_floor == 0:
        tile_t = T                         # whole time axis (full-dim block, no pad)
        nb = _largest_divisor_leq(
            N, min(_MAX_NB, max(1, target_cols // max(T, 1))))
    else:
        tile_t = max(128, min(t_floor, (target_cols // 128) * 128))
        nb = 1

    def n_steps(nb_, tt_):
        return (-(-N // nb_)) * (-(-T // tt_))

    # Don't shard tiny problems just to manufacture pipeline steps.
    eff_min_steps = min(min_steps,
                        max(1, (N * F * T * out_item) // (256 * 1024)))
    while nb > 1 and n_steps(nb, tile_t) < eff_min_steps:
        nb = _largest_divisor_leq(N, nb - 1)
    if n_steps(nb, tile_t) < eff_min_steps and t_floor >= 256:
        want_t = -(-eff_min_steps // (-(-N // nb)))
        tile_t = max(128, ((T // want_t) // 128) * 128)

    # Keep double-buffered blocks (+ resident W) inside the VMEM budget.
    budget = int(0.75 * (vmem_limit if vmem_limit else 32 << 20))

    def vmem_need(nb_, tt_):
        return 2 * nb_ * tt_ * (M * in_item + F * out_item) + 2 * F * M * 4

    while vmem_need(nb, tile_t) > budget:
        if nb > 1:
            nb = _largest_divisor_leq(N, nb - 1)
        elif tile_t > 128:
            tile_t = max(128, (tile_t // 2) // 128 * 128)
        else:
            break
    return nb, tile_t


# ----------------------------------------------------------------------------
# Wrapper.
# ----------------------------------------------------------------------------
def inverse_mel_scale_pallas(w, melspec, *, output_dtype=None,
                             target_out_bytes=None, min_steps=_MIN_GRID_STEPS):
    """w: (F, M) = pinv(fb).T; melspec: (..., M, T) -> (..., F, T), clamped at 0."""
    orig_shape = melspec.shape
    M, T = orig_shape[-2], orig_shape[-1]
    F = w.shape[0]
    assert w.shape == (F, M), (w.shape, (F, M))

    out_dtype = melspec.dtype if output_dtype is None else jnp.dtype(output_dtype)
    in_item = jnp.dtype(melspec.dtype).itemsize
    out_item = jnp.dtype(out_dtype).itemsize

    mel_flat = melspec.reshape((-1, M, T))               # pure view, no HBM copy
    N = mel_flat.shape[0]

    gen_cols, gen_bytes, vmem_limit = _generation_params()
    if target_out_bytes is not None:                     # test / tuning override
        gen_bytes, gen_cols = target_out_bytes, 128
    nb, tile_t = _choose_tiling(N, M, F, T, in_item, out_item,
                                gen_cols, gen_bytes, vmem_limit, min_steps)
    grid = (pl.cdiv(N, nb), pl.cdiv(T, tile_t))

    w32 = w.astype(jnp.float32)                          # keep pinv weights in f32
    if nb == 1:
        kernel = _inverse_mel_kernel
        mel_spec = pl.BlockSpec((None, M, tile_t), lambda b, t: (b, 0, t))
        out_spec = pl.BlockSpec((None, F, tile_t), lambda b, t: (b, 0, t))
    else:
        kernel = _inverse_mel_kernel_batched
        mel_spec = pl.BlockSpec((nb, M, tile_t), lambda b, t: (b, 0, t))
        out_spec = pl.BlockSpec((nb, F, tile_t), lambda b, t: (b, 0, t))

    cost = pl.CostEstimate(
        flops=2 * N * F * M * T,
        transcendentals=0,
        bytes_accessed=N * M * T * in_item + N * F * T * out_item + F * M * 4)

    out = pl.pallas_call(
        kernel,
        out_shape=jax.ShapeDtypeStruct((N, F, T), out_dtype),
        grid_spec=pltpu.PrefetchScalarGridSpec(
            num_scalar_prefetch=0,
            grid=grid,
            in_specs=[pl.BlockSpec((F, M), lambda b, t: (0, 0)),   # resident W
                      mel_spec],
            out_specs=out_spec),
        compiler_params=pltpu.CompilerParams(
            dimension_semantics=("parallel", "parallel"),
            vmem_limit_bytes=vmem_limit),
        cost_estimate=cost,
    )(w32, mel_flat)

    return out.reshape(orig_shape[:-2] + (F, T))


class InverseMelScaleJAX:
    """JAX/Pallas equivalent of torchaudio.transforms.InverseMelScale forward."""

    def __init__(self, sample_rate, n_fft, n_mels, f_min=0.0, f_max=None):
        # Explicit None check (the PyTorch `f_max or ...` idiom silently maps
        # an explicit f_max=0.0 to Nyquist).
        f_max = float(sample_rate // 2) if f_max is None else f_max
        n_freqs = n_fft // 2 + 1
        fb = melscale_fbanks(n_freqs, f_min, f_max, n_mels, sample_rate)
        # PyTorch stores self.fb = pinv(fb) of shape (n_mels, n_freqs); the
        # einops repeat 'f m -> n m f' transposes it, so the weight applied to
        # melspec is pinv(fb).T with shape (n_freqs, n_mels).
        # TODO(synk): modern torchaudio solves a per-call lstsq instead of
        # applying a cached pinv; the two agree only for full-column-rank fb.
        self.w = jnp.linalg.pinv(fb).T                   # (n_freqs, n_mels), f32

    def __call__(self, melspec, output_dtype=None):
        return inverse_mel_scale_pallas(self.w, melspec, output_dtype=output_dtype)


if __name__ == "__main__":
    sample_rate = 16000
    n_fft = 64            # -> n_freqs = 33
    n_mels = 16
    batch, channels, time = 2, 3, 8

    key = jax.random.PRNGKey(0)
    k1, k2 = jax.random.split(key)
    module = InverseMelScaleJAX(sample_rate, n_fft, n_mels)

    def ref(mel):
        return jnp.maximum(jnp.einsum("fm,...mt->...ft", module.w, mel), 0.0)

    # 1) Short time axis: batch-folded (nb, M, T) blocks, native layout,
    #    no wrapper-side transposes.
    melspec = jax.random.uniform(
        k1, (batch, channels, n_mels, time), dtype=jnp.float32)
    spec = jax.block_until_ready(module(melspec))
    assert spec.shape == (batch, channels, n_fft // 2 + 1, time), spec.shape
    assert jnp.allclose(spec, ref(melspec), atol=1e-5, rtol=1e-5)

    # 2) Non-multiple time axis with forced 128-column tiles: exercises the
    #    partial-last-block masking path (no jnp.pad / post-slice anywhere).
    melspec2 = jax.random.uniform(k2, (batch, n_mels, 300), dtype=jnp.float32)
    spec2 = jax.block_until_ready(
        inverse_mel_scale_pallas(module.w, melspec2,
                                 target_out_bytes=128 * (n_fft // 2 + 1) * 4,
                                 min_steps=1))
    assert spec2.shape == (batch, n_fft // 2 + 1, 300), spec2.shape
    assert jnp.allclose(spec2, ref(melspec2), atol=1e-5, rtol=1e-5)

    # 3) Opt-in bf16 output: f32 accumulate on the MXU, cast only at the store.
    spec3 = jax.block_until_ready(module(melspec, output_dtype=jnp.bfloat16))
    assert spec3.dtype == jnp.bfloat16
    assert jnp.allclose(spec3.astype(jnp.float32), ref(melspec),
                        atol=5e-2, rtol=5e-2)

    print("KERNEL_OK")
</pallas_src>

<mosaic_0001>
module attributes {stable_mosaic.version = 11 : i64} {
  func.func @_inverse_mel_kernel_batched(%arg0: i32, %arg1: i32, %arg2: memref<33x16xf32, #tpu.memory_space<vmem>>, %arg3: memref<6x16x8xf32, #tpu.memory_space<vmem>>, %arg4: memref<6x33x8xf32, #tpu.memory_space<vmem>>) attributes {dimension_semantics = [#tpu.dimension_semantics<parallel>, #tpu.dimension_semantics<parallel>], iteration_bounds = array<i64: 1, 1>, scalar_prefetch = 0 : i64, scratch_operands = 0 : i64, tpu.core_type = #tpu.core_type<tc>, window_params = [{pipeline_mode = #tpu.pipeline_mode<synchronous>, transform_indices = @transform_0, window_bounds = array<i64: 33, 16>}, {transform_indices = @transform_1, window_bounds = array<i64: 6, 16, 8>}, {transform_indices = @transform_2, window_bounds = array<i64: 6, 33, 8>}]} {
    %c0 = arith.constant 0 : index
    %c0_0 = arith.constant 0 : index
    %0 = vector.load %arg2[%c0, %c0_0] : memref<33x16xf32, #tpu.memory_space<vmem>>, vector<33x16xf32>
    %c0_1 = arith.constant 0 : index
    %c0_2 = arith.constant 0 : index
    %c0_3 = arith.constant 0 : index
    %1 = vector.load %arg3[%c0_1, %c0_2, %c0_3] : memref<6x16x8xf32, #tpu.memory_space<vmem>>, vector<1x16x8xf32>
    %2 = vector.shape_cast %1 : vector<1x16x8xf32> to vector<16x8xf32>
    %cst = arith.constant dense<0.000000e+00> : vector<33x8xf32>
    %3 = tpu.matmul %0, %2, %cst {dimension_numbers = #tpu.dot_dimension_numbers<[1], [0], [0], [1], [0, 0, 1, 1], [], []>} : vector<33x16xf32>, vector<16x8xf32>, vector<33x8xf32> -> vector<33x8xf32>
    %cst_4 = arith.constant 0.000000e+00 : f32
    %4 = vector.broadcast %cst_4 : f32 to vector<33x8xf32>
    %5 = arith.maximumf %3, %4 : vector<33x8xf32>
    %c0_5 = arith.constant 0 : index
    %c0_6 = arith.constant 0 : index
    %c0_7 = arith.constant 0 : index
    %6 = vector.load %arg4[%c0_5, %c0_6, %c0_7] : memref<6x33x8xf32, #tpu.memory_space<vmem>>, vector<1x33x8xf32>
    %7 = vector.shape_cast %6 : vector<1x33x8xf32> to vector<33x8xf32>
    %8 = vector.shape_cast %5 : vector<33x8xf32> to vector<1x33x8xf32>
    tpu.vector_store %arg4[%c0_5, %c0_6, %c0_7], %8 {strides = array<i32>} : memref<6x33x8xf32, #tpu.memory_space<vmem>>, vector<1x33x8xf32>,
    %c1 = arith.constant 1 : index
    %c0_8 = arith.constant 0 : index
    %c0_9 = arith.constant 0 : index
    %9 = vector.load %arg3[%c1, %c0_8, %c0_9] : memref<6x16x8xf32, #tpu.memory_space<vmem>>, vector<1x16x8xf32>
    %10 = vector.shape_cast %9 : vector<1x16x8xf32> to vector<16x8xf32>
    %cst_10 = arith.constant dense<0.000000e+00> : vector<33x8xf32>
    %11 = tpu.matmul %0, %10, %cst_10 {dimension_numbers = #tpu.dot_dimension_numbers<[1], [0], [0], [1], [0, 0, 1, 1], [], []>} : vector<33x16xf32>, vector<16x8xf32>, vector<33x8xf32> -> vector<33x8xf32>
    %cst_11 = arith.constant 0.000000e+00 : f32
    %12 = vector.broadcast %cst_11 : f32 to vector<33x8xf32>
    %13 = arith.maximumf %11, %12 : vector<33x8xf32>
    %c1_12 = arith.constant 1 : index
    %c0_13 = arith.constant 0 : index
    %c0_14 = arith.constant 0 : index
    %14 = vector.load %arg4[%c1_12, %c0_13, %c0_14] : memref<6x33x8xf32, #tpu.memory_space<vmem>>, vector<1x33x8xf32>
    %15 = vector.shape_cast %14 : vector<1x33x8xf32> to vector<33x8xf32>
    %16 = vector.shape_cast %13 : vector<33x8xf32> to vector<1x33x8xf32>
    tpu.vector_store %arg4[%c1_12, %c0_13, %c0_14], %16 {strides = array<i32>} : memref<6x33x8xf32, #tpu.memory_space<vmem>>, vector<1x33x8xf32>,
    %c2 = arith.constant 2 : index
    %c0_15 = arith.constant 0 : index
    %c0_16 = arith.constant 0 : index
    %17 = vector.load %arg3[%c2, %c0_15, %c0_16] : memref<6x16x8xf32, #tpu.memory_space<vmem>>, vector<1x16x8xf32>
    %18 = vector.shape_cast %17 : vector<1x16x8xf32> to vector<16x8xf32>
    %cst_17 = arith.constant dense<0.000000e+00> : vector<33x8xf32>
    %19 = tpu.matmul %0, %18, %cst_17 {dimension_numbers = #tpu.dot_dimension_numbers<[1], [0], [0], [1], [0, 0, 1, 1], [], []>} : vector<33x16xf32>, vector<16x8xf32>, vector<33x8xf32> -> vector<33x8xf32>
    %cst_18 = arith.constant 0.000000e+00 : f32
    %20 = vector.broadcast %cst_18 : f32 to vector<33x8xf32>
    %21 = arith.maximumf %19, %20 : vector<33x8xf32>
    %c2_19 = arith.constant 2 : index
    %c0_20 = arith.constant 0 : index
    %c0_21 = arith.constant 0 : index
    %22 = vector.load %arg4[%c2_19, %c0_20, %c0_21] : memref<6x33x8xf32, #tpu.memory_space<vmem>>, vector<1x33x8xf32>
    %23 = vector.shape_cast %22 : vector<1x33x8xf32> to vector<33x8xf32>
    %24 = vector.shape_cast %21 : vector<33x8xf32> to vector<1x33x8xf32>
    tpu.vector_store %arg4[%c2_19, %c0_20, %c0_21], %24 {strides = array<i32>} : memref<6x33x8xf32, #tpu.memory_space<vmem>>, vector<1x33x8xf32>,
    %c3 = arith.constant 3 : index
    %c0_22 = arith.constant 0 : index
    %c0_23 = arith.constant 0 : index
    %25 = vector.load %arg3[%c3, %c0_22, %c0_23] : memref<6x16x8xf32, #tpu.memory_space<vmem>>, vector<1x16x8xf32>
    %26 = vector.shape_cast %25 : vector<1x16x8xf32> to vector<16x8xf32>
    %cst_24 = arith.constant dense<0.000000e+00> : vector<33x8xf32>
    %27 = tpu.matmul %0, %26, %cst_24 {dimension_numbers = #tpu.dot_dimension_numbers<[1], [0], [0], [1], [0, 0, 1, 1], [], []>} : vector<33x16xf32>, vector<16x8xf32>, vector<33x8xf32> -> vector<33x8xf32>
    %cst_25 = arith.constant 0.000000e+00 : f32
    %28 = vector.broadcast %cst_25 : f32 to vector<33x8xf32>
    %29 = arith.maximumf %27, %28 : vector<33x8xf32>
    %c3_26 = arith.constant 3 : index
    %c0_27 = arith.constant 0 : index
    %c0_28 = arith.constant 0 : index
    %30 = vector.load %arg4[%c3_26, %c0_27, %c0_28] : memref<6x33x8xf32, #tpu.memory_space<vmem>>, vector<1x33x8xf32>
    %31 = vector.shape_cast %30 : vector<1x33x8xf32> to vector<33x8xf32>
    %32 = vector.shape_cast %29 : vector<33x8xf32> to vector<1x33x8xf32>
    tpu.vector_store %arg4[%c3_26, %c0_27, %c0_28], %32 {strides = array<i32>} : memref<6x33x8xf32, #tpu.memory_space<vmem>>, vector<1x33x8xf32>,
    %c4 = arith.constant 4 : index
    %c0_29 = arith.constant 0 : index
    %c0_30 = arith.constant 0 : index
    %33 = vector.load %arg3[%c4, %c0_29, %c0_30] : memref<6x16x8xf32, #tpu.memory_space<vmem>>, vector<1x16x8xf32>
    %34 = vector.shape_cast %33 : vector<1x16x8xf32> to vector<16x8xf32>
    %cst_31 = arith.constant dense<0.000000e+00> : vector<33x8xf32>
    %35 = tpu.matmul %0, %34, %cst_31 {dimension_numbers = #tpu.dot_dimension_numbers<[1], [0], [0], [1], [0, 0, 1, 1], [], []>} : vector<33x16xf32>, vector<16x8xf32>, vector<33x8xf32> -> vector<33x8xf32>
    %cst_32 = arith.constant 0.000000e+00 : f32
    %36 = vector.broadcast %cst_32 : f32 to vector<33x8xf32>
    %37 = arith.maximumf %35, %36 : vector<33x8xf32>
    %c4_33 = arith.constant 4 : index
    %c0_34 = arith.constant 0 : index
    %c0_35 = arith.constant 0 : index
    %38 = vector.load %arg4[%c4_33, %c0_34, %c0_35] : memref<6x33x8xf32, #tpu.memory_space<vmem>>, vector<1x33x8xf32>
    %39 = vector.shape_cast %38 : vector<1x33x8xf32> to vector<33x8xf32>
    %40 = vector.shape_cast %37 : vector<33x8xf32> to vector<1x33x8xf32>
    tpu.vector_store %arg4[%c4_33, %c0_34, %c0_35], %40 {strides = array<i32>} : memref<6x33x8xf32, #tpu.memory_space<vmem>>, vector<1x33x8xf32>,
    %c5 = arith.constant 5 : index
    %c0_36 = arith.constant 0 : index
    %c0_37 = arith.constant 0 : index
    %41 = vector.load %arg3[%c5, %c0_36, %c0_37] : memref<6x16x8xf32, #tpu.memory_space<vmem>>, vector<1x16x8xf32>
    %42 = vector.shape_cast %41 : vector<1x16x8xf32> to vector<16x8xf32>
    %cst_38 = arith.constant dense<0.000000e+00> : vector<33x8xf32>
    %43 = tpu.matmul %0, %42, %cst_38 {dimension_numbers = #tpu.dot_dimension_numbers<[1], [0], [0], [1], [0, 0, 1, 1], [], []>} : vector<33x16xf32>, vector<16x8xf32>, vector<33x8xf32> -> vector<33x8xf32>
    %cst_39 = arith.constant 0.000000e+00 : f32
    %44 = vector.broadcast %cst_39 : f32 to vector<33x8xf32>
    %45 = arith.maximumf %43, %44 : vector<33x8xf32>
    %c5_40 = arith.constant 5 : index
    %c0_41 = arith.constant 0 : index
    %c0_42 = arith.constant 0 : index
    %46 = vector.load %arg4[%c5_40, %c0_41, %c0_42] : memref<6x33x8xf32, #tpu.memory_space<vmem>>, vector<1x33x8xf32>
    %47 = vector.shape_cast %46 : vector<1x33x8xf32> to vector<33x8xf32>
    %48 = vector.shape_cast %45 : vector<33x8xf32> to vector<1x33x8xf32>
    tpu.vector_store %arg4[%c5_40, %c0_41, %c0_42], %48 {strides = array<i32>} : memref<6x33x8xf32, #tpu.memory_space<vmem>>, vector<1x33x8xf32>,
    return
  }
  func.func @transform_0(%arg0: i32, %arg1: i32) -> (i32, i32) {
    %c0_i32 = arith.constant 0 : i32
    %c0_i32_0 = arith.constant 0 : i32
    %c0_i32_1 = arith.constant 0 : i32
    return %c0_i32, %c0_i32_0 : i32, i32
  }
  func.func @transform_1(%arg0: i32, %arg1: i32) -> (i32, i32, i32) {
    %c0_i32 = arith.constant 0 : i32
    %c0_i32_0 = arith.constant 0 : i32
    return %arg0, %c0_i32, %arg1 : i32, i32, i32
  }
  func.func @transform_2(%arg0: i32, %arg1: i32) -> (i32, i32, i32) {
    %c0_i32 = arith.constant 0 : i32
    %c0_i32_0 = arith.constant 0 : i32
    return %arg0, %c0_i32, %arg1 : i32, i32, i32
  }
}

</mosaic_0001>

<bundles_post_ra>
// kernel: tpu_custom_call.1
= control target key start
LH: loop header
LB: loop body
LE: loop exit
PB: predicated region body
PF: predicated region fallthrough
CT: control target
= control target key end

     0   :  { %vm18_vm0 = vcmask 130048   ;;  %vm71_vm1 = vcmask 64512   ;;  %vm76_vm2 = vcmask 57344   ;;  %s597_s1 = inlined_call_operand.vmem [shape: f32[6,16,8], index: 1, kind: input, shape index: {}]   ;;  %s598_s0 = inlined_call_operand.vmem [shape: f32[33,16], index: 0, kind: input, shape index: {}]   ;;  %s599_s2 = inlined_call_operand.vmem [shape: f32[6,33,8], index: 2, kind: output, shape index: {}]  }
   0x1   :  { %v17_v0 = vld [vmem:[%s597_s1 + $0x8] sm:$0xff]  ;;  %v318_v1 = vld [vmem:[%s597_s1 + $0x18] sm:$0xff]  ;;  %v16_v2 = vld [vmem:[%s597_s1] sm:$0xff] }
   0x2   :  { %48 = vmatpush.msra.mxu0 %v17_v0  ;;  %95 = vmatpush.msra.mxu1 %v318_v1  ;;  %v317_v3 = vld [vmem:[%s597_s1 + $0x10] sm:$0xff]  ;;  %v11_v4 = vld [vmem:[%s598_s0] sm:$0xff]  ;;  %v354_v5 = vld [vmem:[%s597_s1 + $0x48] sm:$0xff] }
   0x3   :  { %377 = vmatpush.msra.mxu2 %v17_v0  ;;  %379 = vmatpush.msra.mxu3 %v318_v1  ;;  %v366_v6 = vld [vmem:[%s597_s1 + $0x58] sm:$0xff]  ;;  %v330_v8 = vld [vmem:[%s597_s1 + $0x28] sm:$0xff]  ;;  %v353_v10 = vld [vmem:[%s597_s1 + $0x40] sm:$0xff] }
   0x4   :  { %49 = vmatpush.msra.mxu0 %v16_v2  ;;  %96 = vmatpush.msra.mxu1 %v317_v3  ;;  %v14_v7 = vld [vmem:[%s598_s0 + $0x18] sm:$0xff]  ;;  %v365_v11 = vld [vmem:[%s597_s1 + $0x50] sm:$0xff]  ;;  %v329_v12 = vld [vmem:[%s597_s1 + $0x20] sm:$0xff] }
   0x5   :  { %312 = vmatmul.msk.f32.vlgmr.msra.gmra.mxu0 %vm18_vm0, %v11_v4  ;;  %319 = vmatmul.msk.f32.vlgmr.msra.gmra.mxu1 %vm18_vm0, %v11_v4  ;;  %v342_v9 = vld [vmem:[%s597_s1 + $0x38] sm:$0xff]  ;;  %v341_v13 = vld [vmem:[%s597_s1 + $0x30] sm:$0xff]  ;;  %v12_v14 = vld [vmem:[%s598_s0 + $0x8] sm:$0xff] }
   0x6   :  { %233 = vmatpush.msrb.mxu0 %v354_v5  ;;  %279 = vmatpush.msrb.mxu1 %v366_v6  ;;  %v15_v15 = vld [vmem:[%s598_s0 + $0x20] sm:$0x1]  ;;  %v13_v16 = vld [vmem:[%s598_s0 + $0x10] sm:$0xff] }
   0x7   :  { %378 = vmatpush.msra.mxu2 %v16_v2  ;;  %380 = vmatpush.msra.mxu3 %v317_v3 }
   0x8   :  { %315 = vmatmul.msk.f32.vlgmr.msra.gmra.mxu2 %vm18_vm0, %v14_v7  ;;  %322 = vmatmul.msk.f32.vlgmr.msra.gmra.mxu3 %vm18_vm0, %v14_v7 }
   0x9   :  { %141 = vmatpush.msrb.mxu2 %v330_v8  ;;  %187 = vmatpush.msrb.mxu3 %v342_v9 }
   0xa   :  { %234 = vmatpush.msrb.mxu0 %v353_v10  ;;  %280 = vmatpush.msrb.mxu1 %v365_v11 }
   0xb   :  { %142 = vmatpush.msrb.mxu2 %v329_v12  ;;  %188 = vmatpush.msrb.mxu3 %v341_v13 }
   0xd   :  { %313 = vmatmul.msk.f32.gmra.mxu0 %vm18_vm0, %v12_v14  ;;  %320 = vmatmul.msk.f32.gmra.mxu1 %vm18_vm0, %v12_v14 }
  0x10   :  { %316 = vmatmul.msk.f32.gmra.mxu2 %vm18_vm0, %v15_v15  ;;  %323 = vmatmul.msk.f32.gmra.mxu3 %vm18_vm0, %v15_v15 }
  0x15   :  { %314 = vmatmul.msk.f32.gmra.mxu0 %vm18_vm0, %v13_v16  ;;  %321 = vmatmul.msk.f32.gmra.mxu1 %vm18_vm0, %v13_v16 }
  0x18   :  { %331 = vmatmul.msk.f32.vlgmr.msrb.gmra.mxu2 %vm18_vm0, %v11_v4  ;;  %343 = vmatmul.msk.f32.vlgmr.msrb.gmra.mxu3 %vm18_vm0, %v11_v4 }
  0x1d   :  { %355 = vmatmul.msk.f32.vlgmr.msrb.gmra.mxu0 %vm18_vm0, %v11_v4  ;;  %367 = vmatmul.msk.f32.vlgmr.msrb.gmra.mxu1 %vm18_vm0, %v11_v4 }
  0x20   :  { %332 = vmatmul.msk.f32.gmra.mxu2 %vm18_vm0, %v12_v14  ;;  %344 = vmatmul.msk.f32.gmra.mxu3 %vm18_vm0, %v12_v14 }
  0x25   :  { %356 = vmatmul.msk.f32.gmra.mxu0 %vm18_vm0, %v12_v14  ;;  %368 = vmatmul.msk.f32.gmra.mxu1 %vm18_vm0, %v12_v14 }
  0x28   :  { %333 = vmatmul.msk.f32.gmra.mxu2 %vm18_vm0, %v13_v16  ;;  %345 = vmatmul.msk.f32.gmra.mxu3 %vm18_vm0, %v13_v16 }
  0x2d   :  { %357 = vmatmul.msk.f32.gmra.mxu0 %vm18_vm0, %v13_v16  ;;  %369 = vmatmul.msk.f32.gmra.mxu1 %vm18_vm0, %v13_v16 }
  0x30   :  { %334 = vmatmul.msk.f32.gmra.mxu2 %vm18_vm0, %v14_v7  ;;  %346 = vmatmul.msk.f32.gmra.mxu3 %vm18_vm0, %v14_v7 }
  0x35   :  { %358 = vmatmul.msk.f32.gmra.mxu0 %vm18_vm0, %v14_v7  ;;  %370 = vmatmul.msk.f32.gmra.mxu1 %vm18_vm0, %v14_v7 }
  0x38   :  { %335 = vmatmul.msk.f32.gmra.mxu2 %vm18_vm0, %v15_v15  ;;  %347 = vmatmul.msk.f32.gmra.mxu3 %vm18_vm0, %v15_v15 }
  0x3d   :  { %359 = vmatmul.msk.f32.gmra.mxu0 %vm18_vm0, %v15_v15  ;;  %371 = vmatmul.msk.f32.gmra.mxu1 %vm18_vm0, %v15_v15 }
  0x82   :  { %v51_v17 = vpop.f32.mrf.mxu0  ;;  %v98_v18 = vpop.f32.mrf.mxu1 }
  0x83   :  { %v66_v19 = vmax.f32 %v51_v17, 0.0  ;;  %v113_v20 = vmax.f32 %v98_v18, 0.0 }
  0x85   :  { %72 = vst.msk [vmem:[%s599_s2] sm:$0xff] %vm71_vm1, %v66_v19 }
  0x86   :  { %324 = vst.msk [vmem:[%s599_s2 + $0x28] sm:$0xff] %vm71_vm1, %v113_v20 }
  0x8a   :  { %v54_v21 = vpop.f32.mrf.mxu0  ;;  %v101_v22 = vpop.f32.mrf.mxu1 }
  0x8b   :  { %v67_v23 = vmax.f32 %v54_v21, 0.0  ;;  %v60_v24 = vpop.f32.mrf.mxu2  ;;  %v114_v25 = vmax.f32 %v101_v22, 0.0  ;;  %v107_v26 = vpop.f32.mrf.mxu3 }
  0x8c   :  { %v69_v27 = vmax.f32 %v60_v24, 0.0  ;;  %v116_v28 = vmax.f32 %v107_v26, 0.0 }
  0x8d   :  { %73 = vst.msk [vmem:[%s599_s2 + $0x8] sm:$0xff] %vm71_vm1, %v67_v23 }
  0x8e   :  { %75 = vst.msk [vmem:[%s599_s2 + $0x18] sm:$0xff] %vm71_vm1, %v69_v27 }
  0x8f   :  { %325 = vst.msk [vmem:[%s599_s2 + $0x30] sm:$0xff] %vm71_vm1, %v114_v25 }
  0x90   :  { %327 = vst.msk [vmem:[%s599_s2 + $0x40] sm:$0xff] %vm71_vm1, %v116_v28 }
  0x92   :  { %v57_v29 = vpop.f32.mrf.mxu0  ;;  %v104_v30 = vpop.f32.mrf.mxu1 }
  0x93   :  { %v68_v31 = vmax.f32 %v57_v29, 0.0  ;;  %v63_v32 = vpop.f32.mrf.mxu2  ;;  %v115_v33 = vmax.f32 %v104_v30, 0.0  ;;  %v110_v34 = vpop.f32.mrf.mxu3 }
  0x94   :  { %v70_v35 = vmax.f32 %v63_v32, 0.0  ;;  %v117_v36 = vmax.f32 %v110_v34, 0.0 }
  0x95   :  { %74 = vst.msk [vmem:[%s599_s2 + $0x10] sm:$0xff] %vm71_vm1, %v68_v31 }
  0x96   :  { %77 = vst.msk [vmem:[%s599_s2 + $0x20] sm:$0x1] %vm76_vm2, %v70_v35 }
  0x97   :  { %326 = vst.msk [vmem:[%s599_s2 + $0x38] sm:$0xff] %vm71_vm1, %v115_v33 }
  0x98   :  { %328 = vst.msk [vmem:[%s599_s2 + $0x48] sm:$0x1] %vm76_vm2, %v117_v36 }
  0x9a   :  { %v236_v37 = vpop.f32.mrf.mxu0  ;;  %v282_v38 = vpop.f32.mrf.mxu1 }
  0x9b   :  { %v144_v39 = vpop.f32.mrf.mxu2  ;;  %v190_v40 = vpop.f32.mrf.mxu3  ;;  %v251_v41 = vmax.f32 %v236_v37, 0.0  ;;  %v297_v44 = vmax.f32 %v282_v38, 0.0 }
  0x9c   :  { %v159_v42 = vmax.f32 %v144_v39, 0.0  ;;  %v205_v43 = vmax.f32 %v190_v40, 0.0 }
  0x9d   :  { %360 = vst.msk [vmem:[%s599_s2 + $0xa0] sm:$0xff] %vm71_vm1, %v251_v41 }
  0x9e   :  { %336 = vst.msk [vmem:[%s599_s2 + $0x50] sm:$0xff] %vm71_vm1, %v159_v42 }
  0x9f   :  { %348 = vst.msk [vmem:[%s599_s2 + $0x78] sm:$0xff] %vm71_vm1, %v205_v43 }
  0xa0   :  { %372 = vst.msk [vmem:[%s599_s2 + $0xc8] sm:$0xff] %vm71_vm1, %v297_v44 }
  0xa2   :  { %v239_v45 = vpop.f32.mrf.mxu0  ;;  %v285_v46 = vpop.f32.mrf.mxu1 }
  0xa3   :  { %v147_v47 = vpop.f32.mrf.mxu2  ;;  %v193_v48 = vpop.f32.mrf.mxu3  ;;  %v252_v49 = vmax.f32 %v239_v45, 0.0  ;;  %v298_v52 = vmax.f32 %v285_v46, 0.0 }
  0xa4   :  { %v160_v50 = vmax.f32 %v147_v47, 0.0  ;;  %v206_v51 = vmax.f32 %v193_v48, 0.0 }
  0xa5   :  { %361 = vst.msk [vmem:[%s599_s2 + $0xa8] sm:$0xff] %vm71_vm1, %v252_v49 }
  0xa6   :  { %337 = vst.msk [vmem:[%s599_s2 + $0x58] sm:$0xff] %vm71_vm1, %v160_v50 }
  0xa7   :  { %349 = vst.msk [vmem:[%s599_s2 + $0x80] sm:$0xff] %vm71_vm1, %v206_v51 }
  0xa8   :  { %373 = vst.msk [vmem:[%s599_s2 + $0xd0] sm:$0xff] %vm71_vm1, %v298_v52 }
  0xaa   :  { %v242_v53 = vpop.f32.mrf.mxu0  ;;  %v288_v54 = vpop.f32.mrf.mxu1 }
  0xab   :  { %v150_v55 = vpop.f32.mrf.mxu2  ;;  %v196_v56 = vpop.f32.mrf.mxu3  ;;  %v253_v57 = vmax.f32 %v242_v53, 0.0  ;;  %v299_v60 = vmax.f32 %v288_v54, 0.0 }
  0xac   :  { %v161_v58 = vmax.f32 %v150_v55, 0.0  ;;  %v207_v59 = vmax.f32 %v196_v56, 0.0 }
  0xad   :  { %362 = vst.msk [vmem:[%s599_s2 + $0xb0] sm:$0xff] %vm71_vm1, %v253_v57 }
  0xae   :  { %338 = vst.msk [vmem:[%s599_s2 + $0x60] sm:$0xff] %vm71_vm1, %v161_v58 }
  0xaf   :  { %350 = vst.msk [vmem:[%s599_s2 + $0x88] sm:$0xff] %vm71_vm1, %v207_v59 }
  0xb0   :  { %374 = vst.msk [vmem:[%s599_s2 + $0xd8] sm:$0xff] %vm71_vm1, %v299_v60 }
  0xb2   :  { %v245_v61 = vpop.f32.mrf.mxu0  ;;  %v291_v62 = vpop.f32.mrf.mxu1 }
  0xb3   :  { %v153_v63 = vpop.f32.mrf.mxu2  ;;  %v199_v0 = vpop.f32.mrf.mxu3  ;;  %v254_v1 = vmax.f32 %v245_v61, 0.0  ;;  %v300_v4 = vmax.f32 %v291_v62, 0.0 }
  0xb4   :  { %v162_v2 = vmax.f32 %v153_v63, 0.0  ;;  %v208_v3 = vmax.f32 %v199_v0, 0.0 }
  0xb5   :  { %363 = vst.msk [vmem:[%s599_s2 + $0xb8] sm:$0xff] %vm71_vm1, %v254_v1 }
  0xb6   :  { %339 = vst.msk [vmem:[%s599_s2 + $0x68] sm:$0xff] %vm71_vm1, %v162_v2 }
  0xb7   :  { %351 = vst.msk [vmem:[%s599_s2 + $0x90] sm:$0xff] %vm71_vm1, %v208_v3 }
  0xb8   :  { %375 = vst.msk [vmem:[%s599_s2 + $0xe0] sm:$0xff] %vm71_vm1, %v300_v4 }
  0xba   :  { %v248_v5 = vpop.f32.mrf.mxu0  ;;  %v294_v6 = vpop.f32.mrf.mxu1 }
  0xbb   :  { %v156_v7 = vpop.f32.mrf.mxu2  ;;  %v202_v8 = vpop.f32.mrf.mxu3  ;;  %v255_v9 = vmax.f32 %v248_v5, 0.0  ;;  %v301_v12 = vmax.f32 %v294_v6, 0.0 }
  0xbc   :  { %v163_v10 = vmax.f32 %v156_v7, 0.0  ;;  %v209_v11 = vmax.f32 %v202_v8, 0.0 }
  0xbd   :  { %364 = vst.msk [vmem:[%s599_s2 + $0xc0] sm:$0x1] %vm76_vm2, %v255_v9 }
  0xbe   :  { %340 = vst.msk [vmem:[%s599_s2 + $0x70] sm:$0x1] %vm76_vm2, %v163_v10 }
  0xbf   :  { %352 = vst.msk [vmem:[%s599_s2 + $0x98] sm:$0x1] %vm76_vm2, %v209_v11 }
  0xc0   :  { %376 = vst.msk [vmem:[%s599_s2 + $0xe8] sm:$0x1] %vm76_vm2, %v301_v12 }

</bundles_post_ra>
